<compile_context>
chip_gen: v7x
topology: tpu7x:2x2x1
jax: 0.10.0
libtpu: 0.0.40
codegen_flags: <defaults>
</compile_context>

<pallas_src>
import jax
import jax.numpy as jnp
from jax.experimental import pallas as pl
from jax.experimental.pallas import tpu as pltpu


def _score_kernel(x_ref, w1_ref, b1_ref, w2_ref, b2_ref, o_ref):
    # On-chip cast to bf16 (VPU filler, hidden under DMA/MXU); f32 accumulation.
    x = x_ref[...].astype(jnp.bfloat16)                               # (TB, D)

    # Fused first layer for both heads: (TB, D) @ (D, 256) on the MXU.
    h = jnp.dot(x, w1_ref[...], preferred_element_type=jnp.float32) + b1_ref[...]
    h = jnp.clip(h, -1.0, 1.0)                                        # Hardtanh [-1, 1]

    # Fused block-diagonal second layer: (TB, 256) @ (256, 3).
    #   col 0 -> synt score, col 1 -> sent logit 0, col 2 -> sent logit 1.
    out = jnp.dot(h.astype(jnp.bfloat16), w2_ref[...],
                  preferred_element_type=jnp.float32) + b2_ref[...]   # (TB, 3) f32

    # 2-class softmax == sigmoid(z1 - z0); single EUP tanh, inherently stable.
    d = out[:, 2:3] - out[:, 1:2]
    p1 = 0.5 * (1.0 + jnp.tanh(0.5 * d))
    p0 = 1.0 - p1                                                     # sums to 1 exactly

    # Write the three columns directly (store-slot work, no iota/select assembly).
    o_ref[:, 0:1] = out[:, 0:1]
    o_ref[:, 1:2] = p0
    o_ref[:, 2:3] = p1


def score_forward(x, packed, *, tile_b=None):
    """x: (B, 5*embed_dim) float32.  packed: output of pack_params().

    Returns (synt_score (B, 1) f32, sent_score (B, 2) f32)."""
    B, D = x.shape
    H2 = packed["w1"].shape[1]              # 2 * hidden (= 256)

    if tile_b is None:
        # Large tiles to amortize per-grid-step overhead; 16-aligned; never force
        # grid >= 2 (single-TC v5e/v6e gain nothing from splitting the batch).
        tile_b = min(2048, ((B + 15) // 16) * 16)
    tile_b = max(16, ((tile_b + 15) // 16) * 16)

    n_blocks = pl.cdiv(B, tile_b)           # ragged last block is masked by the pipeline

    # TODO(synk): on v7x, consider pltpu.CORE_PARALLEL on the batch axis so the two
    # TensorCores demonstrably split the grid; "parallel" is kept here for portability.
    out = pl.pallas_call(
        _score_kernel,
        out_shape=jax.ShapeDtypeStruct((B, 3), jnp.float32),
        grid=(n_blocks,),
        in_specs=[
            pl.BlockSpec((tile_b, D), lambda i: (i, 0)),   # x tile (f32, cast in-kernel)
            pl.BlockSpec((D, H2), lambda i: (0, 0)),       # fused W1 (bf16, resident)
            pl.BlockSpec((1, H2), lambda i: (0, 0)),       # fused b1 (f32)
            pl.BlockSpec((H2, 3), lambda i: (0, 0)),       # block-diag W2 (bf16)
            pl.BlockSpec((1, 3), lambda i: (0, 0)),        # fused b2 (f32)
        ],
        out_specs=pl.BlockSpec((tile_b, 3), lambda i: (i, 0)),
        compiler_params=pltpu.CompilerParams(
            dimension_semantics=("parallel",)),
    )(x, packed["w1"], packed["b1"], packed["w2"], packed["b2"])

    synt = out[:, 0:1]
    sent = out[:, 1:3]
    return synt, sent


def pack_params(params):
    """Fuse the two branches' weights for the kernel.

    W1: (D, 2H) = [w1s | w1e];  W2: (2H, 3) block-diagonal with
    rows 0:H, col 0   = w2s   and   rows H:2H, cols 1:3 = w2e.
    Matmul weights are cast to bf16; biases stay f32 (added after f32 accumulation)."""
    H = params["w1s"].shape[1]
    w1 = jnp.concatenate([params["w1s"], params["w1e"]], axis=1)       # (D, 2H)
    b1 = jnp.concatenate([params["b1s"], params["b1e"]], axis=1)       # (1, 2H)
    w2 = jnp.zeros((2 * H, 3), jnp.float32)
    w2 = w2.at[:H, 0:1].set(params["w2s"])
    w2 = w2.at[H:, 1:3].set(params["w2e"])
    b2 = jnp.concatenate([params["b2s"], params["b2e"]], axis=1)       # (1, 3)
    return {
        "w1": w1.astype(jnp.bfloat16),
        "b1": b1.astype(jnp.float32),
        "w2": w2.astype(jnp.bfloat16),
        "b2": b2.astype(jnp.float32),
    }


def init_params(key, embed_dim=32, hidden=128):
    """Deterministic synthetic parameter init (uniform, torch-Linear-like scale)."""
    D = 5 * embed_dim
    ks = jax.random.split(key, 8)

    def u(k, shape, fan_in):
        bound = 1.0 / jnp.sqrt(fan_in)
        return jax.random.uniform(k, shape, jnp.float32, -bound, bound)

    return {
        # synt branch
        "w1s": u(ks[0], (D, hidden), D),
        "b1s": u(ks[1], (1, hidden), D),
        "w2s": u(ks[2], (hidden, 1), hidden),
        "b2s": u(ks[3], (1, 1), hidden),
        # sent branch
        "w1e": u(ks[4], (D, hidden), D),
        "b1e": u(ks[5], (1, hidden), D),
        "w2e": u(ks[6], (hidden, 2), hidden),
        "b2e": u(ks[7], (1, 2), hidden),
    }


def _reference(x, p):
    """Pure-JAX f32 reference of the PyTorch module."""
    h = jnp.clip(x @ p["w1s"] + p["b1s"], -1.0, 1.0)
    synt = h @ p["w2s"] + p["b2s"]
    g = jnp.clip(x @ p["w1e"] + p["b1e"], -1.0, 1.0)
    sent = jax.nn.softmax(g @ p["w2e"] + p["b2e"], axis=-1)
    return synt, sent


if __name__ == "__main__":
    embed_dim = 32          # opt.embed_dim
    batch = 20              # deliberately not tile-aligned: exercises the ragged block
    D = 5 * embed_dim       # 160

    key = jax.random.PRNGKey(0)
    k_x, k_p = jax.random.split(key)
    x = jax.random.normal(k_x, (batch, D), dtype=jnp.float32)
    params = init_params(k_p, embed_dim=embed_dim)
    packed = pack_params(params)

    synt, sent = score_forward(x, packed)
    jax.block_until_ready((synt, sent))

    # sanity check vs. pure-JAX f32 reference (relaxed tolerance: bf16 MXU inputs).
    ref_synt, ref_sent = _reference(x, params)
    assert synt.shape == (batch, 1) and sent.shape == (batch, 2)
    assert jnp.allclose(synt, ref_synt, atol=2e-2, rtol=2e-2)
    assert jnp.allclose(sent, ref_sent, atol=2e-2, rtol=2e-2)
    assert jnp.allclose(jnp.sum(sent, axis=-1), 1.0, atol=1e-5)

    print("KERNEL_OK")
</pallas_src>

<mosaic_0001>
module attributes {stable_mosaic.version = 11 : i64} {
  func.func @_score_kernel(%arg0: i32, %arg1: memref<32x160xf32, #tpu.memory_space<vmem>>, %arg2: memref<160x256xbf16, #tpu.memory_space<vmem>>, %arg3: memref<1x256xf32, #tpu.memory_space<vmem>>, %arg4: memref<256x3xbf16, #tpu.memory_space<vmem>>, %arg5: memref<1x3xf32, #tpu.memory_space<vmem>>, %arg6: memref<32x3xf32, #tpu.memory_space<vmem>>) attributes {dimension_semantics = [#tpu.dimension_semantics<parallel>], iteration_bounds = array<i64: 1>, scalar_prefetch = 0 : i64, scratch_operands = 0 : i64, tpu.core_type = #tpu.core_type<tc>, window_params = [{transform_indices = @transform_0, window_bounds = array<i64: 32, 160>}, {pipeline_mode = #tpu.pipeline_mode<synchronous>, transform_indices = @transform_1, window_bounds = array<i64: 160, 256>}, {pipeline_mode = #tpu.pipeline_mode<synchronous>, transform_indices = @transform_2, window_bounds = array<i64: 1, 256>}, {pipeline_mode = #tpu.pipeline_mode<synchronous>, transform_indices = @transform_3, window_bounds = array<i64: 256, 3>}, {pipeline_mode = #tpu.pipeline_mode<synchronous>, transform_indices = @transform_4, window_bounds = array<i64: 1, 3>}, {transform_indices = @transform_5, window_bounds = array<i64: 32, 3>}]} {
    %c0 = arith.constant 0 : index
    %c0_0 = arith.constant 0 : index
    %0 = vector.load %arg1[%c0, %c0_0] : memref<32x160xf32, #tpu.memory_space<vmem>>, vector<32x160xf32>
    %1 = arith.truncf %0 : vector<32x160xf32> to vector<32x160xbf16>
    %c0_1 = arith.constant 0 : index
    %c0_2 = arith.constant 0 : index
    %2 = vector.load %arg2[%c0_1, %c0_2] : memref<160x256xbf16, #tpu.memory_space<vmem>>, vector<160x256xbf16>
    %cst = arith.constant dense<0.000000e+00> : vector<32x256xf32>
    %3 = tpu.matmul %1, %2, %cst {dimension_numbers = #tpu.dot_dimension_numbers<[1], [0], [0], [1], [0, 0, 1, 1], [], []>} : vector<32x160xbf16>, vector<160x256xbf16>, vector<32x256xf32> -> vector<32x256xf32>
    %c0_3 = arith.constant 0 : index
    %c0_4 = arith.constant 0 : index
    %4 = vector.load %arg3[%c0_3, %c0_4] : memref<1x256xf32, #tpu.memory_space<vmem>>, vector<1x256xf32>
    %5 = vector.broadcast %4 : vector<1x256xf32> to vector<32x256xf32>
    %6 = arith.addf %3, %5 : vector<32x256xf32>
    %cst_5 = arith.constant -1.000000e+00 : f32
    %cst_6 = arith.constant 1.000000e+00 : f32
    %7 = vector.broadcast %cst_5 : f32 to vector<32x256xf32>
    %8 = arith.maximumf %7, %6 : vector<32x256xf32>
    %9 = vector.broadcast %cst_6 : f32 to vector<32x256xf32>
    %10 = arith.minimumf %9, %8 : vector<32x256xf32>
    %11 = arith.truncf %10 : vector<32x256xf32> to vector<32x256xbf16>
    %c0_7 = arith.constant 0 : index
    %c0_8 = arith.constant 0 : index
    %12 = vector.load %arg4[%c0_7, %c0_8] : memref<256x3xbf16, #tpu.memory_space<vmem>>, vector<256x3xbf16>
    %cst_9 = arith.constant dense<0.000000e+00> : vector<32x3xf32>
    %13 = tpu.matmul %11, %12, %cst_9 {dimension_numbers = #tpu.dot_dimension_numbers<[1], [0], [0], [1], [0, 0, 1, 1], [], []>} : vector<32x256xbf16>, vector<256x3xbf16>, vector<32x3xf32> -> vector<32x3xf32>
    %c0_10 = arith.constant 0 : index
    %c0_11 = arith.constant 0 : index
    %14 = vector.load %arg5[%c0_10, %c0_11] : memref<1x3xf32, #tpu.memory_space<vmem>>, vector<1x3xf32>
    %15 = vector.broadcast %14 : vector<1x3xf32> to vector<32x3xf32>
    %16 = arith.addf %13, %15 : vector<32x3xf32>
    %17 = vector.extract_strided_slice %16 {offsets = [0, 2], sizes = [32, 1], strides = [1, 1]} : vector<32x3xf32> to vector<32x1xf32>
    %18 = vector.extract_strided_slice %16 {offsets = [0, 1], sizes = [32, 1], strides = [1, 1]} : vector<32x3xf32> to vector<32x1xf32>
    %19 = arith.subf %17, %18 : vector<32x1xf32>
    %cst_12 = arith.constant 5.000000e-01 : f32
    %20 = vector.broadcast %cst_12 : f32 to vector<32x1xf32>
    %21 = arith.mulf %20, %19 : vector<32x1xf32>
    %22 = math.tanh %21 : vector<32x1xf32>
    %cst_13 = arith.constant 1.000000e+00 : f32
    %23 = vector.broadcast %cst_13 : f32 to vector<32x1xf32>
    %24 = arith.addf %23, %22 : vector<32x1xf32>
    %cst_14 = arith.constant 5.000000e-01 : f32
    %25 = vector.broadcast %cst_14 : f32 to vector<32x1xf32>
    %26 = arith.mulf %25, %24 : vector<32x1xf32>
    %cst_15 = arith.constant 1.000000e+00 : f32
    %27 = vector.broadcast %cst_15 : f32 to vector<32x1xf32>
    %28 = arith.subf %27, %26 : vector<32x1xf32>
    %29 = vector.extract_strided_slice %16 {offsets = [0, 0], sizes = [32, 1], strides = [1, 1]} : vector<32x3xf32> to vector<32x1xf32>
    %c0_16 = arith.constant 0 : index
    %c0_17 = arith.constant 0 : index
    %30 = vector.load %arg6[%c0_16, %c0_17] : memref<32x3xf32, #tpu.memory_space<vmem>>, vector<32x1xf32>
    tpu.vector_store %arg6[%c0_16, %c0_17], %29 {strides = array<i32>} : memref<32x3xf32, #tpu.memory_space<vmem>>, vector<32x1xf32>,
    %c0_18 = arith.constant 0 : index
    %c1 = arith.constant 1 : index
    %31 = vector.load %arg6[%c0_18, %c1] : memref<32x3xf32, #tpu.memory_space<vmem>>, vector<32x1xf32>
    tpu.vector_store %arg6[%c0_18, %c1], %28 {strides = array<i32>} : memref<32x3xf32, #tpu.memory_space<vmem>>, vector<32x1xf32>,
    %c0_19 = arith.constant 0 : index
    %c2 = arith.constant 2 : index
    %32 = vector.load %arg6[%c0_19, %c2] : memref<32x3xf32, #tpu.memory_space<vmem>>, vector<32x1xf32>
    tpu.vector_store %arg6[%c0_19, %c2], %26 {strides = array<i32>} : memref<32x3xf32, #tpu.memory_space<vmem>>, vector<32x1xf32>,
    return
  }
  func.func @transform_0(%arg0: i32) -> (i32, i32) {
    %c0_i32 = arith.constant 0 : i32
    %c0_i32_0 = arith.constant 0 : i32
    return %arg0, %c0_i32 : i32, i32
  }
  func.func @transform_1(%arg0: i32) -> (i32, i32) {
    %c0_i32 = arith.constant 0 : i32
    %c0_i32_0 = arith.constant 0 : i32
    %c0_i32_1 = arith.constant 0 : i32
    return %c0_i32, %c0_i32_0 : i32, i32
  }
  func.func @transform_2(%arg0: i32) -> (i32, i32) {
    %c0_i32 = arith.constant 0 : i32
    %c0_i32_0 = arith.constant 0 : i32
    %c0_i32_1 = arith.constant 0 : i32
    return %c0_i32, %c0_i32_0 : i32, i32
  }
  func.func @transform_3(%arg0: i32) -> (i32, i32) {
    %c0_i32 = arith.constant 0 : i32
    %c0_i32_0 = arith.constant 0 : i32
    %c0_i32_1 = arith.constant 0 : i32
    return %c0_i32, %c0_i32_0 : i32, i32
  }
  func.func @transform_4(%arg0: i32) -> (i32, i32) {
    %c0_i32 = arith.constant 0 : i32
    %c0_i32_0 = arith.constant 0 : i32
    %c0_i32_1 = arith.constant 0 : i32
    return %c0_i32, %c0_i32_0 : i32, i32
  }
  func.func @transform_5(%arg0: i32) -> (i32, i32) {
    %c0_i32 = arith.constant 0 : i32
    %c0_i32_0 = arith.constant 0 : i32
    return %arg0, %c0_i32 : i32, i32
  }
}

</mosaic_0001>

<bundles_post_ra>
// kernel: tpu_custom_call.1
= control target key start
LH: loop header
LB: loop body
LE: loop exit
PB: predicated region body
PF: predicated region fallthrough
CT: control target
= control target key end

     0   :  { %10 = vsyncpa [#allocation3], 0  ;;  %s721_s18 = smov [#allocation2]   ;;  %s860_s0 = inlined_call_operand.vmem [shape: f32[20,160], index: 0, kind: input, shape index: {}]   ;;  %s861_s1 = inlined_call_operand.hbm [shape: bf16[160,256], index: 1, kind: input, shape index: {}]   ;;  %s862_s2 = inlined_call_operand.vmem [shape: f32[1,256], index: 2, kind: input, shape index: {}]   ;;  %s863_s3 = inlined_call_operand.vmem [shape: bf16[256,3], index: 3, kind: input, shape index: {}]   ;;  %s864_s4 = inlined_call_operand.vmem [shape: f32[1,3], index: 4, kind: input, shape index: {}]   ;;  %s865_s5 = inlined_call_operand.vmem [shape: f32[20,3], index: 5, kind: output, shape index: {}]  }
   0x1   :  { %s18_s19 = sshll.u32 %s721_s18, 4  ;;  %s697_s22 = scalar_lea.hbm %s861_s1, 2560  ;;  %s19_s19 = int_to_ptr.vmem [resolvable:$true] %s18_s19 }
   0x2   :  { %p698_p0 = scmp.ne.s32.totalorder %s861_s1, %s697_s22  ;;  %p701_p1 = scmp.lt.u32.totalorder %s697_s22, %s861_s1 }
   0x4   :  { %p703_p2 = pnand %p701_p1, %p698_p0 }
   0x6   :  { %706 = shalt.err (!%p703_p2)
}
   0x7   :  { %s707_s27 = scalar_lea.vmem %s19_s19, 2560  ;;  %p712_p4 = scmp.lt.s32.totalorder %s19_s19, %s19_s19 }
   0x8   :  { %p708_p3 = scmp.ne.s32.totalorder %s19_s19, %s707_s27  ;;  %p713_p5 = scmp.lt.s32.totalorder %s707_s27, %s707_s27 }
   0xa   :  { %p714_p6 = por %p713_p5, %p712_p4 }
   0xc   :  { %p715_p7 = pnand %p714_p6, %p708_p3 }
   0xe   :  { %718 = shalt.err (!%p715_p7)
}
   0xf   :  { %s722_s28 = smov 128   ;;  %s723_s29 = smov 8  }
  0x10   :  { %24 = dma.hbm_to_vmem [thread:$0]  %s861_s1, 2560, %s19_s19, [#allocation3], %s722_s28, %s722_s28, %s723_s29  }
  0x11   :  { %719 = dma.done.wait [#allocation3], 2560  }
  0x12   :  { %720 = vsyncadd [#allocation3], 4294964736  ;;  %v643_v0 = vld [vmem:[#allocation2 + $0x4] ss:$8 sps:$4 sm:$0xff]   ;;  %v645_v1 = vld [vmem:[#allocation2] ss:$8 sps:$4 sm:$0xff]   ;;  %v69_v48 = vlaneseq }
  0x13   :  { %186 = vmatprep.subr.bf16.mxu0 %v643_v0  ;;  %v646_v2 = vld [vmem:[#allocation2 + $0x14] ss:$8 sps:$4 sm:$0xff]   ;;  %v648_v3 = vld [vmem:[#allocation2 + $0x10] ss:$8 sps:$4 sm:$0xff]   ;;  %v649_v4 = vld [vmem:[#allocation2 + $0x24] ss:$8 sps:$4 sm:$0xff]  }
  0x14   :  { %187 = vmatpush1.bf16.msra.mxu0 %v645_v1  ;;  %v651_v5 = vld [vmem:[#allocation2 + $0x20] ss:$8 sps:$4 sm:$0xff]   ;;  %v652_v6 = vld [vmem:[#allocation2 + $0x34] ss:$8 sps:$4 sm:$0xff]   ;;  %v654_v7 = vld [vmem:[#allocation2 + $0x30] ss:$8 sps:$4 sm:$0xff]  }
  0x15   :  { %188 = vmatprep.subr.bf16.mxu0 %v646_v2  ;;  %v655_v8 = vld [vmem:[#allocation2 + $0x44] ss:$8 sps:$4 sm:$0xff]   ;;  %v38_v10 = vld [vmem:[%s860_s0 + $0x18] sm:$0xff]  ;;  %vm179_vm0 = vcmask 261120   ;;  %v657_v12 = vld [vmem:[#allocation2 + $0x40] ss:$8 sps:$4 sm:$0xff]  }
  0x16   :  { %v36_v9 = vld [vmem:[%s860_s0 + $0x8] sm:$0xff]  ;;  %v658_v13 = vld [vmem:[#allocation2 + $0x54] ss:$8 sps:$4 sm:$0xff]   ;;  %v673_v14 = vld [vmem:[%s863_s3 + $0x40] sm:$0xff]   ;;  %v70_v49 = vshrl.u32 %v69_v48, 7  ;;  %vm483_vm1 = vcmask 7168  }
  0x17   :  { %v44_v11 = vpack.c.bf16 %v38_v10, %v36_v9  ;;  %v660_v15 = vld [vmem:[#allocation2 + $0x50] ss:$8 sps:$4 sm:$0xff]   ;;  %v674_v16 = vld [vmem:[%s863_s3] sm:$0xff]   ;;  %610 = vmatprep.subr.bf16.mxu1 %v673_v14  ;;  %v675_v18 = vld [vmem:[%s863_s3 + $0x48] sm:$0xff]   ;;  %s724_s29 = smov 1   ;;  %vm504_vm2 = vcmask 15368  }
  0x18   :  { %189 = vmatpush1.bf16.msra.mxu0 %v648_v3  ;;  %v661_v17 = vld [vmem:[#allocation2 + $0x64] ss:$8 sps:$4 sm:$0xff]   ;;  %611 = vmatpush3.bf16.msra.mxu1 %v674_v16  ;;  %v677_v20 = vld [vmem:[%s863_s3 + $0x50] sm:$0xff]   ;;  %v663_v21 = vld [vmem:[#allocation2 + $0x60] ss:$8 sps:$4 sm:$0xff]   ;;  %v71_v50 = vsub.s32 0, %v70_v49 }
  0x19   :  { %190 = vmatprep.subr.bf16.mxu0 %v649_v4  ;;  %583 = vmatprep.mubr.msk.bf16.mxu0 %vm179_vm0, %v44_v11  ;;  %v676_v19 = vld [vmem:[%s863_s3 + $0x8] sm:$0xff]   ;;  %v664_v22 = vld [vmem:[#allocation2 + $0x74] ss:$8 sps:$4 sm:$0xff]   ;;  %v666_v25 = vld [vmem:[#allocation2 + $0x70] ss:$8 sps:$4 sm:$0xff]   ;;  %v75_v52 = vsub.s32 1, %v70_v49 }
  0x1a   :  { %612 = vmatprep.subr.bf16.mxu1 %v675_v18  ;;  %v678_v23 = vld [vmem:[%s863_s3 + $0x10] sm:$0xff]   ;;  %v679_v24 = vld [vmem:[%s863_s3 + $0x58] sm:$0xff]   ;;  %v667_v26 = vld [vmem:[#allocation2 + $0x84] ss:$8 sps:$4 sm:$0xff]   ;;  %vm509_vm3 = vcmask 23568  }
  0x1b   :  { %v680_v27 = vld [vmem:[%s863_s3 + $0x18] sm:$0xff]   ;;  %v681_v28 = vld [vmem:[%s863_s3 + $0x60] sm:$0xff]   ;;  %v683_v32 = vld [vmem:[%s863_s3 + $0x68] sm:$0xff]  }
  0x1c   :  { %191 = vmatpush1.bf16.msra.mxu0 %v651_v5  ;;  %613 = vmatpush3.bf16.msra.mxu1 %v676_v19  ;;  %v669_v29 = vld [vmem:[#allocation2 + $0x80] ss:$8 sps:$4 sm:$0xff]   ;;  %v670_v31 = vld [vmem:[#allocation2 + $0x94] ss:$8 sps:$4 sm:$0xff]   ;;  %v672_v33 = vld [vmem:[#allocation2 + $0x90] ss:$8 sps:$4 sm:$0xff]  }
  0x1d   :  { %192 = vmatprep.subr.bf16.mxu0 %v652_v6  ;;  %614 = vmatprep.subr.bf16.mxu1 %v677_v20  ;;  %v682_v30 = vld [vmem:[%s863_s3 + $0x20] sm:$0xff]   ;;  %v37_v35 = vld [vmem:[%s860_s0 + $0x10] sm:$0xff]  ;;  %v40_v36 = vld [vmem:[%s860_s0 + $0x28] sm:$0xff] }
  0x1e   :  { %v35_v34 = vld [vmem:[%s860_s0] sm:$0xff]  ;;  %v42_v37 = vld [vmem:[%s860_s0 + $0x38] sm:$0xff]  ;;  %v41_v41 = vld [vmem:[%s860_s0 + $0x30] sm:$0xff] }
  0x1f   :  { %v43_v38 = vpack.c.bf16 %v37_v35, %v35_v34  ;;  %v46_v39 = vpack.c.bf16 %v42_v37, %v40_v36  ;;  %v39_v40 = vld [vmem:[%s860_s0 + $0x20] sm:$0xff]  ;;  %v684_v43 = vld [vmem:[%s863_s3 + $0x28] sm:$0xff]   ;;  %v685_v44 = vld [vmem:[%s863_s3 + $0x70] sm:$0xff]  }
  0x20   :  { %193 = vmatpush1.bf16.msra.mxu0 %v654_v7  ;;  %615 = vmatpush3.bf16.msra.mxu1 %v678_v23  ;;  %v45_v42 = vpack.c.bf16 %v41_v41, %v39_v40  ;;  %v686_v45 = vld [vmem:[%s863_s3 + $0x30] sm:$0xff]   ;;  %v687_v46 = vld [vmem:[%s863_s3 + $0x78] sm:$0xff]   ;;  %v67_v51 = vld [vmem:[%s862_s2] sm:$0x3] }
  0x21   :  { %194 = vmatprep.subr.bf16.mxu0 %v655_v8  ;;  %616 = vmatprep.subr.bf16.mxu1 %v679_v24  ;;  %v688_v47 = vld [vmem:[%s863_s3 + $0x38] sm:$0xff]   ;;  %v72_v53 = vrot.slane %v67_v51, %v71_v50  ;;  %v76_v54 = vrot.slane %v67_v51, %v75_v52  ;;  %v593_v20 = vld [vmem:[%s864_s4] ss:$0 sm:$0xff]  ;;  %s725_s4 = smov 127  }
  0x24   :  { %195 = vmatpush1.bf16.msra.mxu0 %v657_v12  ;;  %617 = vmatpush3.bf16.msra.mxu1 %v680_v27 }
  0x25   :  { %196 = vmatprep.subr.bf16.mxu0 %v658_v13  ;;  %618 = vmatprep.subr.bf16.mxu1 %v681_v28 }
  0x28   :  { %197 = vmatpush1.bf16.msra.mxu0 %v660_v15  ;;  %619 = vmatpush3.bf16.msra.mxu1 %v682_v30 }
  0x29   :  { %198 = vmatprep.subr.bf16.mxu0 %v661_v17  ;;  %620 = vmatprep.subr.bf16.mxu1 %v683_v32 }
  0x2c   :  { %199 = vmatpush1.bf16.msra.mxu0 %v663_v21  ;;  %621 = vmatpush3.bf16.msra.mxu1 %v684_v43 }
  0x2d   :  { %200 = vmatprep.subr.bf16.mxu0 %v664_v22  ;;  %622 = vmatprep.subr.bf16.mxu1 %v685_v44 }
  0x30   :  { %201 = vmatpush1.bf16.msra.mxu0 %v666_v25  ;;  %623 = vmatpush3.bf16.msra.mxu1 %v686_v45 }
  0x31   :  { %202 = vmatprep.subr.bf16.mxu0 %v667_v26  ;;  %624 = vmatprep.subr.bf16.mxu1 %v687_v46 }
  0x34   :  { %203 = vmatpush1.bf16.msra.mxu0 %v669_v29  ;;  %625 = vmatpush3.bf16.msra.mxu1 %v688_v47 }
  0x35   :  { %204 = vmatprep.subr.bf16.mxu0 %v670_v31 }
  0x38   :  { %205 = vmatpush1.bf16.msra.mxu0 %v672_v33 }
  0x3b   :  { %219 = vmatmul.mubr.bf16.vlgmr.msra.gmra.mrb[0].mxu0 %v43_v38 }
  0x3c   :  { %584 = vmatprep.mubr.msk.bf16.mxu0 %vm179_vm0, %v46_v39 }
  0x43   :  { %229 = vmatmul.mubr.bf16.gmra.mrb[4].mxu0 %v45_v42 }
 0x10e   :  { %v220_v55 = vpop.f32.mrb[0].mxu0 }
 0x10f   :  { %v221_v56 = vadd.f32 %v220_v55, %v72_v53  ;;  %v222_v57 = vpop.f32.mrb[1].mxu0 }
 0x110   :  { %v223_v58 = vadd.f32 %v222_v57, %v76_v54  ;;  %v224_v59 = vpop.f32.mrb[2].mxu0 }
 0x111   :  { %v225_v60 = vadd.f32 %v224_v59, %v72_v53  ;;  %v226_v61 = vpop.f32.mrb[3].mxu0  ;;  %v585_v63 = vclamps-f32 %v221_v56, 1.0 }
 0x112   :  { %v227_v62 = vadd.f32 %v226_v61, %v76_v54  ;;  %v586_v1 = vclamps-f32 %v223_v58, 1.0 }
 0x113   :  { %v587_v0 = vclamps-f32 %v225_v60, 1.0 }
 0x114   :  { %v588_v2 = vclamps-f32 %v227_v62, 1.0 }
 0x115   :  { %v255_v3 = vpack.c.bf16 %v587_v0, %v585_v63 }
 0x116   :  { %v230_v4 = vpop.f32.mrb[4].mxu0  ;;  %v256_v5 = vpack.c.bf16 %v588_v2, %v586_v1 }
 0x117   :  { %v231_v6 = vadd.f32 %v230_v4, %v72_v53  ;;  %v232_v7 = vpop.f32.mrb[5].mxu0 }
 0x118   :  { %v233_v8 = vadd.f32 %v232_v7, %v76_v54  ;;  %v234_v9 = vpop.f32.mrb[6].mxu0  ;;  %426 = vmatprep.mubr.bf16.mxu1 %v256_v5 }
 0x119   :  { %v235_v10 = vadd.f32 %v234_v9, %v72_v53  ;;  %v236_v11 = vpop.f32.mrb[7].mxu0  ;;  %427 = vmatmul.mubr.bf16.vlgmr.msra.gmra.mrb[0].mxu1 %v255_v3  ;;  %v589_v13 = vclamps-f32 %v231_v6, 1.0 }
 0x11a   :  { %v237_v12 = vadd.f32 %v236_v11, %v76_v54  ;;  %v590_v15 = vclamps-f32 %v233_v8, 1.0 }
 0x11b   :  { %v591_v14 = vclamps-f32 %v235_v10, 1.0 }
 0x11c   :  { %v592_v16 = vclamps-f32 %v237_v12, 1.0 }
 0x11d   :  { %v257_v17 = vpack.c.bf16 %v591_v14, %v589_v13 }
 0x11e   :  { %v258_v18 = vpack.c.bf16 %v592_v16, %v590_v15 }
 0x120   :  { %434 = vmatprep.mubr.bf16.mxu1 %v258_v18 }
 0x121   :  { %435 = vmatmul.mubr.bf16.gmra.mrb[4].mxu1 %v257_v17 }
 0x1ec   :  { %v626_v19 = vpop.f32.mrb[0].mxu1 }
 0x1ed   :  { %v627_v21 = vpop.f32.mrb[1].mxu1 }
 0x1ee   :  { %v628_v22 = vadd.f32 %v627_v21, %v626_v19  ;;  %v629_v23 = vpop.f32.mrb[2].mxu1 }
 0x1ef   :  { %v630_v24 = vpop.f32.mrb[3].mxu1 }
 0x1f0   :  { %v429_v25 = vadd.f32 %v628_v22, %v593_v20  ;;  %v631_v26 = vadd.f32 %v630_v24, %v629_v23 }
 0x1f2   :  { %484 = vst.msk [vmem:[#allocation4] sm:$0xff] %vm483_vm1, %v429_v25  ;;  %v432_v27 = vadd.f32 %v631_v26, %v593_v20  ;;  %447 = vrot.lane.b32.xlu0 %v429_v25, %s724_s29 }
 0x1f4   :  { %485 = vst.msk [vmem:[#allocation4 + $0x8] sm:$0xff] %vm483_vm1, %v432_v27  ;;  %v632_v28 = vpop.f32.mrb[4].mxu1 }
 0x1f5   :  { %v633_v29 = vpop.f32.mrb[5].mxu1 }
 0x1f6   :  { %v634_v30 = vadd.f32 %v633_v29, %v632_v28  ;;  %v635_v31 = vpop.f32.mrb[6].mxu1  ;;  %449 = vrot.lane.b32.xlu0 %v432_v27, %s724_s29 }
 0x1f7   :  { %v636_v32 = vpop.f32.mrb[7].mxu1 }
 0x1f8   :  { %v437_v33 = vadd.f32 %v634_v30, %v593_v20  ;;  %v637_v34 = vadd.f32 %v636_v32, %v635_v31 }
 0x1fa   :  { %486 = vst.msk [vmem:[#allocation4 + $0x10] sm:$0xff] %vm483_vm1, %v437_v33  ;;  %v440_v35 = vadd.f32 %v637_v34, %v593_v20  ;;  %451 = vrot.lane.b32.xlu1 %v437_v33, %s724_s29 }
 0x1fe   :  { %453 = vrot.lane.b32.xlu1 %v440_v35, %s724_s29 }
 0x264   :  { %v448_v36 = vpop.permute.xlu0 %447 }
 0x265   :  { %v459_v37 = vsub.f32 %v429_v25, %v448_v36 }
 0x267   :  { %v463_v38 = vmul.f32 0.5, %v459_v37 }
 0x268   :  { %v450_v39 = vpop.permute.xlu0 %449 }
 0x269   :  { %689 = vtanh.f32 %v463_v38  ;;  %v460_v40 = vsub.f32 %v432_v27, %v450_v39 }
 0x26b   :  { %v464_v41 = vmul.f32 0.5, %v460_v40 }
 0x26c   :  { %v452_v42 = vpop.permute.xlu1 %451 }
 0x26d   :  { %691 = vtanh.f32 %v464_v41  ;;  %v461_v43 = vsub.f32 %v437_v33, %v452_v42 }
 0x26f   :  { %v465_v44 = vmul.f32 0.5, %v461_v43 }
 0x270   :  { %v454_v45 = vpop.permute.xlu1 %453 }
 0x271   :  { %693 = vtanh.f32 %v465_v44  ;;  %v462_v46 = vsub.f32 %v440_v35, %v454_v45 }
 0x273   :  { %v690_v47 = vpop.eup %689  ;;  %v466_v48 = vmul.f32 0.5, %v462_v46 }
 0x274   :  { %v471_v49 = vadd.f32 1.0, %v690_v47 }
 0x275   :  { %695 = vtanh.f32 %v466_v48 }
 0x276   :  { %v475_v50 = vmul.f32 0.5, %v471_v49 }
 0x277   :  { %v692_v51 = vpop.eup %691 }
 0x278   :  { %v472_v52 = vadd.f32 1.0, %v692_v51  ;;  %v479_v53 = vsub.f32 1.0, %v475_v50 }
 0x27a   :  { %v476_v54 = vmul.f32 0.5, %v472_v52  ;;  %492 = vrot.lane.b32.xlu0 %v479_v53, %s725_s4 }
 0x27b   :  { %v694_v55 = vpop.eup %693 }
 0x27c   :  { %v473_v56 = vadd.f32 1.0, %v694_v55  ;;  %v480_v57 = vsub.f32 1.0, %v476_v54 }
 0x27e   :  { %v477_v58 = vmul.f32 0.5, %v473_v56  ;;  %494 = vrot.lane.b32.xlu1 %v480_v57, %s725_s4 }
 0x27f   :  { %v696_v59 = vpop.eup %695 }
 0x280   :  { %v474_v60 = vadd.f32 1.0, %v696_v59  ;;  %v481_v61 = vsub.f32 1.0, %v477_v58 }
 0x282   :  { %v478_v62 = vmul.f32 0.5, %v474_v60  ;;  %496 = vrot.lane.b32.xlu0 %v481_v61, %s725_s4 }
 0x284   :  { %v482_v63 = vsub.f32 1.0, %v478_v62 }
 0x286   :  { %498 = vrot.lane.b32.xlu1 %v482_v63, %s725_s4 }
 0x2ec   :  { %v493_v0 = vpop.permute.xlu0 %492 }
 0x2ed   :  { %505 = vst.msk [vmem:[#allocation4] sm:$0xff] %vm504_vm2, %v493_v0 }
 0x2ee   :  { %510 = vst.msk [vmem:[#allocation4] sm:$0xff] %vm509_vm3, %v475_v50 }
 0x2f0   :  { %v495_v1 = vpop.permute.xlu1 %494 }
 0x2f1   :  { %506 = vst.msk [vmem:[#allocation4 + $0x8] sm:$0xff] %vm504_vm2, %v495_v1 }
 0x2f2   :  { %511 = vst.msk [vmem:[#allocation4 + $0x8] sm:$0xff] %vm509_vm3, %v476_v54 }
 0x2f4   :  { %v497_v2 = vpop.permute.xlu0 %496 }
 0x2f5   :  { %v547_v3 = vld [vmem:[#allocation4] sm:$0xff]  ;;  %507 = vst.msk [vmem:[#allocation4 + $0x10] sm:$0xff] %vm504_vm2, %v497_v2 }
 0x2f6   :  { %548 = vst [vmem:[%s865_s5] sm:$0xff] %v547_v3  ;;  %512 = vst.msk [vmem:[#allocation4 + $0x10] sm:$0xff] %vm509_vm3, %v477_v58 }
 0x2f8   :  { %v499_v4 = vpop.permute.xlu1 %498 }
 0x2f9   :  { %v549_v5 = vld [vmem:[#allocation4 + $0x8] sm:$0xff] }
 0x2fa   :  { %550 = vst [vmem:[%s865_s5 + $0x8] sm:$0xff] %v549_v5 }
 0x2fd   :  { %v551_v6 = vld [vmem:[#allocation4 + $0x10] sm:$0xff] }
 0x2fe   :  { %552 = vst [vmem:[%s865_s5 + $0x10] sm:$0xff] %v551_v6 }
 0x2ff   :  { %558 = vsyncpa [#allocation3], 1 }

</bundles_post_ra>
